<compile_context>
chip_gen: v7x
topology: tpu7x:2x2x1
jax: 0.10.0
libtpu: 0.0.40
codegen_flags: <defaults>
</compile_context>

<pallas_src>
import functools

import jax
import jax.numpy as jnp
from jax.experimental import pallas as pl
from jax.experimental.pallas import tpu as pltpu


def _round_up(x, m):
    return (x + m - 1) // m * m


def _conv1d_im2col_kernel(xc_ref, xh_ref, w_ref, b_ref, o_ref, *, K):
    # xc_ref: (T, C_in)        current tile of the flattened (B*Lr) row axis
    # xh_ref: (H, C_in)        halo: the H rows immediately before this tile
    # w_ref : (K*C_in, TN)     im2col-folded weight tile
    # b_ref : (1, TN)          bias tile (f32)
    # o_ref : (T, TN)          output tile (shifted coordinates)
    T = xc_ref.shape[0]
    H = xh_ref.shape[0]

    x_cur = xc_ref[...]                                   # load once
    if K > 1:
        # Slice the loaded *value* (not the ref) for the unaligned tail rows.
        halo_tail = xh_ref[...][H - (K - 1):, :]          # (K-1, C_in)
        xe = jnp.concatenate([halo_tail, x_cur], axis=0)  # (T+K-1, C_in)
        # im2col: K shifted views concatenated along lanes -> one contraction.
        cols = jnp.concatenate([xe[k:k + T, :] for k in range(K)], axis=-1)
    else:
        cols = x_cur                                      # (T, C_in)

    acc = jnp.dot(cols, w_ref[...], preferred_element_type=jnp.float32)
    o_ref[...] = (acc + b_ref[...]).astype(o_ref.dtype)   # (1,TN) broadcasts


@functools.partial(jax.jit, static_argnames=("padding", "l_tile", "compute_dtype"))
def custom_conv1d(x, weight, bias, *, padding=0, l_tile=512, compute_dtype=None):
    """x: (B, L, C_in); weight: (C_out, C_in, K) (PyTorch layout); bias: (C_out,)."""
    B, L, C_in = x.shape
    C_out, C_in_w, K = weight.shape
    assert C_in_w == C_in
    L_pad = L + 2 * padding
    L_out = L_pad - K + 1
    assert L_out >= 1

    out_dtype = x.dtype
    cdt = jnp.dtype(compute_dtype) if compute_dtype is not None else jnp.dtype(x.dtype)
    esz = jnp.dtype(cdt).itemsize
    osz = jnp.dtype(out_dtype).itemsize

    # ---- channel padding: lane-dense output (C_out -> multiple of 128) ----
    C_out_p = _round_up(C_out, 128)
    TN = 256 if C_out_p % 256 == 0 else 128               # output lane tile

    # ---- sequence tiling (flattened M = B * Lr rows) ----
    H8 = 8 * max(1, -(-(K - 1) // 8))                     # halo rows, mult of 8, >= K-1
    t_cap = max(8, (64 * 1024) // TN)                     # keep (T,TN) f32 acc <= ~64 vregs
    T = min(max(8, l_tile), t_cap, _round_up(L_pad, 8))
    T = max(_round_up(T, H8), H8)                         # halo block must divide T
    Lr = _round_up(L_pad, T)                              # rounded per-batch length
    tb = T // H8

    # ---- host-side (XLA) prep: pad L, flatten (B, Lr) -> M, fold weight ----
    x_pad = jnp.pad(x, ((0, 0), (padding, padding + (Lr - L_pad)), (0, 0)))
    x_flat = x_pad.reshape(B * Lr, C_in).astype(cdt)
    w2 = jnp.transpose(weight, (2, 1, 0)).reshape(K * C_in, C_out)   # (K*C_in, C_out)
    w2 = jnp.pad(w2, ((0, 0), (0, C_out_p - C_out))).astype(cdt)
    b2 = jnp.pad(bias, (0, C_out_p - C_out)).reshape(1, C_out_p).astype(jnp.float32)

    M = B * Lr
    num_m = M // T
    num_n = C_out_p // TN

    # VMEM budget (double-buffered blocks + in-kernel temporaries) with margin;
    # stays well under v7x's 64 MiB physical VMEM.
    est = (2 * (T * C_in * esz + H8 * C_in * esz + K * C_in * TN * esz
                + TN * 4 + T * TN * osz)
           + 3 * T * (K * C_in) * esz + T * TN * 4)
    vmem_limit = int(min(48 * 2**20, max(32 * 2**20, 2 * est)))

    out_flat = pl.pallas_call(
        functools.partial(_conv1d_im2col_kernel, K=K),
        out_shape=jax.ShapeDtypeStruct((M, C_out_p), out_dtype),
        grid=(num_m, num_n),
        in_specs=[
            # current M-tile of the flattened input
            pl.BlockSpec((T, C_in), lambda m, n: (m, 0)),
            # halo: the H8 rows just before this tile (clamped at the start;
            # the clamped/garbage rows only feed output rows that are sliced off)
            pl.BlockSpec((H8, C_in), lambda m, n: (jnp.maximum(m * tb - 1, 0), 0)),
            # im2col weight and bias tiles (constant across m -> not re-fetched)
            pl.BlockSpec((K * C_in, TN), lambda m, n: (0, n)),
            pl.BlockSpec((1, TN), lambda m, n: (0, n)),
        ],
        out_specs=pl.BlockSpec((T, TN), lambda m, n: (m, n)),
        compiler_params=pltpu.CompilerParams(
            dimension_semantics=("parallel", "parallel"),
            vmem_limit_bytes=vmem_limit),
        cost_estimate=pl.CostEstimate(
            flops=2 * B * L_out * K * C_in * C_out,
            transcendentals=0,
            bytes_accessed=(x_flat.size * esz + w2.size * esz + b2.size * 4
                            + M * C_out_p * osz)),
    )(x_flat, x_flat, w2, b2)

    # Undo the shifted coordinates (first K-1 rows per batch are invalid) and
    # the channel / tail padding.
    out = out_flat.reshape(B, Lr, C_out_p)[:, K - 1:K - 1 + L_out, :C_out]
    return out


def _reference_conv1d(x, weight, bias, padding):
    # Pure-JAX reference mirroring nn.Conv1d applied to x.permute(0,2,1).
    x_ncl = jnp.transpose(x, (0, 2, 1))                  # (B, C_in, L)
    out = jax.lax.conv_general_dilated(
        x_ncl, weight,
        window_strides=(1,),
        padding=[(padding, padding)],
        dimension_numbers=("NCH", "OIH", "NCH"),
    ) + bias[None, :, None]
    return jnp.transpose(out, (0, 2, 1))                 # (B, L_out, C_out)


if __name__ == "__main__":
    # Small shapes consistent with the module's forward.
    B, L, C_in, C_out, K, P = 2, 16, 8, 16, 3, 1

    key = jax.random.PRNGKey(0)
    kx, kw, kb = jax.random.split(key, 3)

    x = jax.random.normal(kx, (B, L, C_in), dtype=jnp.float32)

    # Deterministic PyTorch-style Conv1d init: U(-bound, bound), bound = 1/sqrt(C_in*K)
    bound = 1.0 / (C_in * K) ** 0.5
    weight = jax.random.uniform(kw, (C_out, C_in, K), jnp.float32, -bound, bound)
    bias = jax.random.uniform(kb, (C_out,), jnp.float32, -bound, bound)

    # 1) primary small case (single M tile)
    out = jax.block_until_ready(custom_conv1d(x, weight, bias, padding=P))
    ref = _reference_conv1d(x, weight, bias, P)
    assert out.shape == (B, L + 2 * P - K + 1, C_out)
    assert jnp.allclose(out, ref, atol=1e-4, rtol=1e-4)

    # 2) multi-tile case (exercises the halo path across M tiles and batches)
    x2 = jax.random.normal(kx, (B, 40, C_in), dtype=jnp.float32)
    out2 = jax.block_until_ready(custom_conv1d(x2, weight, bias, padding=P, l_tile=16))
    ref2 = _reference_conv1d(x2, weight, bias, P)
    assert out2.shape == ref2.shape
    assert jnp.allclose(out2, ref2, atol=1e-4, rtol=1e-4)

    # 3) bf16 compute path (v6e / v7x MXU rate, f32 accumulation), loose check
    out3 = jax.block_until_ready(
        custom_conv1d(x, weight, bias, padding=P, compute_dtype=jnp.bfloat16))
    assert jnp.allclose(out3, ref, atol=1e-1, rtol=1e-1)

    print("KERNEL_OK")
</pallas_src>

<mosaic_0001>
module attributes {stable_mosaic.version = 11 : i64} {
  func.func @_conv1d_im2col_kernel(%arg0: i32, %arg1: i32, %arg2: memref<24x8xf32, #tpu.memory_space<vmem>>, %arg3: memref<8x8xf32, #tpu.memory_space<vmem>>, %arg4: memref<24x128xf32, #tpu.memory_space<vmem>>, %arg5: memref<1x128xf32, #tpu.memory_space<vmem>>, %arg6: memref<24x128xf32, #tpu.memory_space<vmem>>) attributes {dimension_semantics = [#tpu.dimension_semantics<parallel>, #tpu.dimension_semantics<parallel>], iteration_bounds = array<i64: 2, 1>, scalar_prefetch = 0 : i64, scratch_operands = 0 : i64, tpu.core_type = #tpu.core_type<tc>, window_params = [{transform_indices = @transform_0, window_bounds = array<i64: 24, 8>}, {transform_indices = @transform_1, window_bounds = array<i64: 8, 8>}, {transform_indices = @transform_2, window_bounds = array<i64: 24, 128>}, {transform_indices = @transform_3, window_bounds = array<i64: 1, 128>}, {transform_indices = @transform_4, window_bounds = array<i64: 24, 128>}]} {
    %c0 = arith.constant 0 : index
    %c0_0 = arith.constant 0 : index
    %0 = vector.load %arg2[%c0, %c0_0] : memref<24x8xf32, #tpu.memory_space<vmem>>, vector<24x8xf32>
    %c0_1 = arith.constant 0 : index
    %c0_2 = arith.constant 0 : index
    %1 = vector.load %arg3[%c0_1, %c0_2] : memref<8x8xf32, #tpu.memory_space<vmem>>, vector<8x8xf32>
    %2 = vector.extract_strided_slice %1 {offsets = [6, 0], sizes = [2, 8], strides = [1, 1]} : vector<8x8xf32> to vector<2x8xf32>
    %3 = tpu.concatenate %2, %0 in 0 : vector<2x8xf32>, vector<24x8xf32> -> vector<26x8xf32>
    %4 = vector.extract_strided_slice %3 {offsets = [0, 0], sizes = [24, 8], strides = [1, 1]} : vector<26x8xf32> to vector<24x8xf32>
    %5 = vector.extract_strided_slice %3 {offsets = [1, 0], sizes = [24, 8], strides = [1, 1]} : vector<26x8xf32> to vector<24x8xf32>
    %6 = vector.extract_strided_slice %3 {offsets = [2, 0], sizes = [24, 8], strides = [1, 1]} : vector<26x8xf32> to vector<24x8xf32>
    %7 = tpu.concatenate %4, %5, %6 in 1 : vector<24x8xf32>, vector<24x8xf32>, vector<24x8xf32> -> vector<24x24xf32>
    %c0_3 = arith.constant 0 : index
    %c0_4 = arith.constant 0 : index
    %8 = vector.load %arg4[%c0_3, %c0_4] : memref<24x128xf32, #tpu.memory_space<vmem>>, vector<24x128xf32>
    %cst = arith.constant dense<0.000000e+00> : vector<24x128xf32>
    %9 = tpu.matmul %7, %8, %cst {dimension_numbers = #tpu.dot_dimension_numbers<[1], [0], [0], [1], [0, 0, 1, 1], [], []>} : vector<24x24xf32>, vector<24x128xf32>, vector<24x128xf32> -> vector<24x128xf32>
    %c0_5 = arith.constant 0 : index
    %c0_6 = arith.constant 0 : index
    %10 = vector.load %arg5[%c0_5, %c0_6] : memref<1x128xf32, #tpu.memory_space<vmem>>, vector<1x128xf32>
    %11 = vector.broadcast %10 : vector<1x128xf32> to vector<24x128xf32>
    %12 = arith.addf %9, %11 : vector<24x128xf32>
    %c0_7 = arith.constant 0 : index
    %c0_8 = arith.constant 0 : index
    %13 = vector.load %arg6[%c0_7, %c0_8] : memref<24x128xf32, #tpu.memory_space<vmem>>, vector<24x128xf32>
    tpu.vector_store %arg6[%c0_7, %c0_8], %12 {strides = array<i32>} : memref<24x128xf32, #tpu.memory_space<vmem>>, vector<24x128xf32>,
    return
  }
  func.func @transform_0(%arg0: i32, %arg1: i32) -> (i32, i32) {
    %c0_i32 = arith.constant 0 : i32
    %c0_i32_0 = arith.constant 0 : i32
    return %arg0, %c0_i32 : i32, i32
  }
  func.func @transform_1(%arg0: i32, %arg1: i32) -> (i32, i32) {
    %c3_i32 = arith.constant 3 : i32
    %0 = arith.muli %arg0, %c3_i32 : i32
    %c1_i32 = arith.constant 1 : i32
    %1 = arith.subi %0, %c1_i32 : i32
    %c0_i32 = arith.constant 0 : i32
    %2 = arith.maxsi %1, %c0_i32 : i32
    %c0_i32_0 = arith.constant 0 : i32
    %c0_i32_1 = arith.constant 0 : i32
    return %2, %c0_i32_0 : i32, i32
  }
  func.func @transform_2(%arg0: i32, %arg1: i32) -> (i32, i32) {
    %c0_i32 = arith.constant 0 : i32
    %c0_i32_0 = arith.constant 0 : i32
    return %c0_i32, %arg1 : i32, i32
  }
  func.func @transform_3(%arg0: i32, %arg1: i32) -> (i32, i32) {
    %c0_i32 = arith.constant 0 : i32
    %c0_i32_0 = arith.constant 0 : i32
    return %c0_i32, %arg1 : i32, i32
  }
  func.func @transform_4(%arg0: i32, %arg1: i32) -> (i32, i32) {
    %c0_i32 = arith.constant 0 : i32
    return %arg0, %arg1 : i32, i32
  }
}

</mosaic_0001>

<bundles_post_ra>
// kernel: custom_conv1d.1
= control target key start
LH: loop header
LB: loop body
LE: loop exit
PB: predicated region body
PF: predicated region fallthrough
CT: control target
= control target key end

     0   :  { %s714_s15 = smov 0   ;;  %s716_s16 = smov 0   ;;  %s782_s0 = inlined_call_operand.vmem [shape: f32[48,8], index: 0, kind: input, shape index: {}, may-alias: {0,1}]   ;;  %s783_s1 = inlined_call_operand.vmem [shape: f32[48,8], index: 1, kind: input, shape index: {}, may-alias: {0,1}]   ;;  %s784_s2 = inlined_call_operand.vmem [shape: f32[24,128], index: 2, kind: input, shape index: {}]   ;;  %s785_s3 = inlined_call_operand.vmem [shape: f32[1,128], index: 3, kind: input, shape index: {}]   ;;  %s786_s4 = inlined_call_operand.vmem [shape: f32[48,128], index: 4, kind: output, shape index: {}]  }
   0x1   :  { %s718_s17 = smov 0  }
   0x2 LB: > { %s26_s18 = sadd.s32 1, %s678_s16  ;;  %p585_p0 = scmp.ge.s32.totalorder %s682_s17, 1  ;;  %s682_s17 = sphi %s718_s17, %s14_s17   ;;  %s678_s16 = sphi %s716_s16, %s788_s16   ;;  %s674_s15 = sphi %s714_s15, %s787_s15  }
   0x3   : > { %p28_p1 = scmp.ge.s32.totalorder %s26_s18, 2  ;;  %p219_p2 = scmp.lt.s32.totalorder %s682_s17, 3 }
   0x5   : > { %s790_s18 = smov (%p28_p1, %s26_s18), 0  ;;  %p220_p3 = pnand %p585_p0, %p219_p2 }
   0x6   : > { %s263_s19 = smul.u32 (!%p220_p3), 3, %s674_s15  ;;  %v684_v0 = vmov (!%p220_p3), 0.0|0.0   ;;  %v360_v1 = vld [vmem:[%s784_s2] sm:$0xff] (!%p220_p3)  ;;  %v361_v2 = vld [vmem:[%s784_s2 + $0x8] sm:$0xff] (!%p220_p3)  ;;  %v685_v4 = vmov (!%p220_p3), 0.0   ;;  %v362_v5 = vld [vmem:[%s784_s2 + $0x10] sm:$0xff] (!%p220_p3) }
   0x7   : > { %223 = sbr.rel (%p220_p3) target bundleno = 366 (0x16e), region = 36  ;;  %627 = vmatprep.subr.bf16.mxu1 (!%p220_p3), %v684_v0  ;;  %624 = vmatprep.subr.bf16.mxu0 (!%p220_p3), %v684_v0  ;;  %v625_v3 = vpack.c.bf16 (!%p220_p3), %v361_v2, %v360_v1  ;;  %vm686_vm0 = vmmov (!%p220_p3), 0   ;;  %vm307_vm1 = vcmask (!%p220_p3), 1041408   ;;  %vm318_vm2 = vcmask (!%p220_p3), 1046528   ;;  %s687_s10 = smov (!%p220_p3), 8  }
   0x8   : > { %p264_p4 = scmp.lt.s32.totalorder (!%p220_p3), %s263_s19, 5  ;;  %s587_s24 = sadd.s32 (!%p220_p3), 4294967295, %s263_s19  ;;  %618 = vmatprep.mubr.msk.f32.mxu1 (!%p220_p3), %vm686_vm0, %v685_v4  ;;  %615 = vmatprep.mubr.msk.f32.mxu0 (!%p220_p3), %vm686_vm0, %v685_v4  ;;  %vm335_vm3 = vcmask (!%p220_p3), 1045504   ;;  %vm352_vm4 = vcmask (!%p220_p3), 64512   ;;  %vm356_vm5 = vcmask (!%p220_p3), 130048   ;;  %vm370_vm6 = vcmask (!%p220_p3), 195584  }
   0x9   : > { %p271_p5 = scmp.gt.s32.totalorder (!%p220_p3), %s587_s24, 0  ;;  %p588_p6 = scmp.lt.s32.totalorder (!%p220_p3), %s587_s24, 5  ;;  %629 = vmatpush3.bf16.msra.mxu1 (!%p220_p3), %v625_v3  ;;  %626 = vmatpush3.bf16.msra.mxu0 (!%p220_p3), %v625_v3  ;;  %v595_v45 = vld [vmem:[%s785_s3] ss:$0 sm:$0xff] (!%p220_p3) }
   0xa   : > { %628 = vmatprep.subr.mxu1 (!%p220_p3), %v685_v4  ;;  %613 = vmatprep.subr.mxu0 (!%p220_p3), %v685_v4  ;;  %s688_s11 = smov (!%p220_p3), 16  }
   0xd   : > { %630 = vmatpush3.msra.mxu1 (!%p220_p3), %v362_v5  ;;  %614 = vmatpush3.msra.mxu0 (!%p220_p3), %v362_v5 }
   0xe   : > { %s792_s19 = smov (!%p264_p4, %s263_s19), 5 }
   0xf   : > { %s272_s25 = scalar_select %p271_p5, %s587_s24, 0 }
  0x10   : > { %s586_s26 = sshll.u32 %s792_s19, 3 }
  0x11   : > { %s267_s5 = scalar_lea.vmem %s782_s0, %s586_s26  ;;  %s794_s25 = smov (!%p588_p6, %s272_s25), 5 }
  0x12   : > { %v297_v6 = vld [vmem:[%s267_s5] sm:$0xff]  ;;  %v298_v7 = vld [vmem:[%s267_s5 + $0x8] sm:$0xff]  ;;  %v299_v8 = vld [vmem:[%s267_s5 + $0x10] sm:$0xff]  ;;  %s593_s6 = sshll.u32 %s794_s25, 3  ;;  %s295_s20 = scalar_lea.vmem %s786_s4, %s586_s26 }
  0x13   : > { %v308_v9 = vrot.slane %v297_v6, 6  ;;  %v309_v10 = vrot.slane %v298_v7, 6  ;;  %v311_v11 = vrot.slane %v299_v8, 6  ;;  %s276_s9 = scalar_lea.vmem %s783_s1, %s593_s6 }
  0x14   : > { %v300_v16 = vld [vmem:[%s276_s9] sm:$0xff] }
  0x15   : > { %v310_v12 = vsel %vm307_vm1, %v308_v9, %v309_v10  ;;  %v312_v13 = vsel %vm307_vm1, %v309_v10, %v311_v11  ;;  %v302_v19 = vrot.slane %v300_v16, 6  ;;  %v324_v25 = vrot.slane %v311_v11, 1 }
  0x16   : > { %v320_v14 = vrot.slane %v310_v12, 1  ;;  %v322_v15 = vrot.slane %v312_v13, 1  ;;  %v337_v17 = vrot.slane %v310_v12, 2  ;;  %v339_v18 = vrot.slane %v312_v13, 2 }
  0x17   : > { %v316_v21 = vsel %vm307_vm1, %v302_v19, %v308_v9  ;;  %v341_v29 = vrot.slane %v311_v11, 2 }
  0x18   : > { %v323_v20 = vsel %vm318_vm2, %v320_v14, %v322_v15  ;;  %v319_v22 = vrot.slane %v316_v21, 1  ;;  %v340_v23 = vsel %vm335_vm3, %v337_v17, %v339_v18  ;;  %v336_v24 = vrot.slane %v316_v21, 2 }
  0x19   : > { %328 = vrot.lane.b32.xlu0 %v323_v20, %s687_s10  ;;  %v325_v28 = vsel %vm318_vm2, %v322_v15, %v324_v25  ;;  %v342_v30 = vsel %vm335_vm3, %v339_v18, %v341_v29 }
  0x1a   : > { %v321_v26 = vsel %vm318_vm2, %v319_v22, %v320_v14  ;;  %v338_v27 = vsel %vm335_vm3, %v336_v24, %v337_v17 }
  0x1b   : > { %326 = vrot.lane.b32.xlu1 %v321_v26, %s687_s10 }
  0x1d   : > { %345 = vrot.lane.b32.xlu0 %v340_v23, %s688_s11 }
  0x1f   : > { %343 = vrot.lane.b32.xlu1 %v338_v27, %s688_s11 }
  0x21   : > { %330 = vrot.lane.b32.xlu0 %v325_v28, %s687_s10 }
  0x23   : > { %347 = vrot.lane.b32.xlu1 %v342_v30, %s688_s11 }
  0x8b   : > { %v329_v31 = vpop.permute.xlu0 %328 }
  0x8c   : > { %v354_v32 = vsel %vm352_vm4, %v310_v12, %v329_v31 }
  0x8d   : > { %v327_v33 = vpop.permute.xlu1 %326 }
  0x8e   : > { %v353_v36 = vsel %vm352_vm4, %v316_v21, %v327_v33 }
  0x8f   : > { %v346_v34 = vpop.permute.xlu0 %345 }
  0x90   : > { %v358_v35 = vsel %vm356_vm5, %v354_v32, %v346_v34 }
  0x91   : > { %619 = vmatmul.mubr.msk.f32.vlgmr.msra.gmra.mrb[0].mxu1 %vm370_vm6, %v358_v35  ;;  %v344_v37 = vpop.permute.xlu1 %343 }
  0x92   : > { %621 = vmatprep.mubr.msk.f32.mxu1 %vm686_vm0, %v685_v4  ;;  %v357_v39 = vsel %vm356_vm5, %v353_v36, %v344_v37 }
  0x93   : > { %v331_v38 = vpop.permute.xlu0 %330  ;;  %616 = vmatmul.mubr.msk.f32.vlgmr.msra.gmra.mrb[0].mxu0 %vm370_vm6, %v357_v39 }
  0x94   : > { %v355_v40 = vsel %vm352_vm4, %v312_v13, %v331_v38 }
  0x95   : > { %v348_v41 = vpop.permute.xlu1 %347 }
  0x96   : > { %v359_v42 = vsel %vm356_vm5, %v355_v40, %v348_v41 }
  0x97   : > { %622 = vmatmul.mubr.msk.f32.gmra.mrb[2].mxu1 %vm370_vm6, %v359_v42 }
 0x164   : > { %v451_v43 = vpop.f32.mrb[0].mxu1 }
 0x165   : > { %v620_v44 = vpop.f32.mrb[1].mxu1  ;;  %v452_v49 = vadd.f32 %v595_v45, %v451_v43 }
 0x166   : > { %v446_v46 = vpop.f32.mrb[0].mxu0 }
 0x167   : > { %v447_v47 = vadd.f32 %v595_v45, %v446_v46  ;;  %v617_v48 = vpop.f32.mrb[1].mxu0  ;;  %461 = vst [vmem:[%s295_s20 + $0x8] sm:$0xff] %v452_v49 }
 0x169   : > { %460 = vst [vmem:[%s295_s20] sm:$0xff] %v447_v47 }
 0x16a   : > { %v456_v50 = vpop.f32.mrb[2].mxu1 }
 0x16b   : > { %v457_v51 = vadd.f32 %v595_v45, %v456_v50  ;;  %v623_v52 = vpop.f32.mrb[3].mxu1 }
 0x16d   : > { %462 = vst [vmem:[%s295_s20 + $0x10] sm:$0xff] %v457_v51 }
 0x16e PF: > { %s14_s17 = sadd.s32 1, %s682_s17   ;;  %s787_s15 = smov %s678_s16 }
 0x16f   : > { %p11_p7 = scmp.ge.s32.totalorder %s14_s17, 4   ;;  %s788_s16 = smov %s790_s18 }
 0x171   :  { %13 = sbr.rel (!%p11_p7) target bundleno = 2 (0x2), region = 75 }

</bundles_post_ra>
